<compile_context>
chip_gen: v6e
topology: v6e:2x2x1
jax: 0.10.0
libtpu: 0.0.40
codegen_flags: <defaults>
</compile_context>

<pallas_src>
import jax
import jax.numpy as jnp
import numpy as np
from jax.experimental import pallas as pl
from jax.experimental.pallas import tpu as pltpu

# --- small synthetic BERT config (stands in for config.bert_path weights) ---
BATCH, SEQ = 2, 8
HIDDEN, HEADS = 32, 2
HEAD_DIM = HIDDEN // HEADS
FFN = 64
LAYERS = 2
VOCAB, TYPE_VOCAB, MAX_POS = 100, 2, 64
NUM_CLASSES = 3            # config.num_classes
LN_EPS = 1e-12
TOKENS = BATCH * SEQ
ATTN_SCALE = 1.0 / float(HEAD_DIM) ** 0.5


# --------------------------- shared math helpers -----------------------------

def _layernorm(x, g, b):
    mean = jnp.mean(x, axis=-1, keepdims=True)
    var = jnp.mean(jnp.square(x - mean), axis=-1, keepdims=True)
    inv = jax.lax.rsqrt(var + LN_EPS)
    return (x - mean) * inv * g + b


def _gelu_tanh(y):
    # TODO(synk): HF BERT default is the exact erf-based gelu; the tanh
    # approximation keeps the math on EUP ops with guaranteed Mosaic lowering.
    return 0.5 * y * (1.0 + jnp.tanh(0.7978845608028654 * (y + 0.044715 * y * y * y)))


# ------------------------------ fused kernel ---------------------------------

def _bert_fused_kernel(
    emb_ref, bias_ref, emb_g_ref, emb_b_ref,
    qkv_w_ref, qkv_b_ref, ao_w_ref, ao_b_ref,
    ln1_g_ref, ln1_b_ref, i_w_ref, i_b_ref, o_w_ref, o_b_ref,
    ln2_g_ref, ln2_b_ref, pool_w_ref, pool_b_ref, cls_w_ref, cls_b_ref,
    logits_ref,
    h_scratch,
):
    layer = pl.program_id(1)

    # First layer step of this batch block: embedding layernorm -> VMEM slab.
    @pl.when(layer == 0)
    def _():
        h_scratch[...] = _layernorm(emb_ref[...], emb_g_ref[...], emb_b_ref[...])

    h = h_scratch[...]                                    # (SEQ, H) float32
    h_bf = h.astype(jnp.bfloat16)

    # Fused QKV projection: single lane-dense bf16 MXU op; the attention scale
    # is pre-folded into the Q columns of qkv_w / qkv_b.
    qkv = (jnp.dot(h_bf, qkv_w_ref[0], preferred_element_type=jnp.float32)
           + qkv_b_ref[0])                                # (SEQ, 3H) f32
    qkv_bf = qkv.astype(jnp.bfloat16)

    # Heads stacked on a leading (major) axis -> one batched dot_general for
    # QK^T and one for PV; no per-(batch,head) python loop.
    q3 = jnp.stack([qkv_bf[:, h_i * HEAD_DIM:(h_i + 1) * HEAD_DIM]
                    for h_i in range(HEADS)])             # (HEADS, SEQ, D)
    k3 = jnp.stack([qkv_bf[:, HIDDEN + h_i * HEAD_DIM:HIDDEN + (h_i + 1) * HEAD_DIM]
                    for h_i in range(HEADS)])
    v3 = jnp.stack([qkv_bf[:, 2 * HIDDEN + h_i * HEAD_DIM:2 * HIDDEN + (h_i + 1) * HEAD_DIM]
                    for h_i in range(HEADS)])

    s = jnp.einsum("hqd,hkd->hqk", q3, k3, preferred_element_type=jnp.float32)
    s = s + bias_ref[0]                                   # (HEADS,S,S) + (S,S) key mask
    s = s - jnp.max(s, axis=-1, keepdims=True)
    p = jnp.exp(s)
    p = p / jnp.sum(p, axis=-1, keepdims=True)            # exact softmax (f32)
    ctx3 = jnp.einsum("hqk,hkd->hqd", p.astype(jnp.bfloat16), v3,
                      preferred_element_type=jnp.float32)  # (HEADS, SEQ, D)

    # Register-resident head merge: lane-axis concatenate (no ctx scratch,
    # no sub-128-lane masked stores).
    ctx = jnp.concatenate([ctx3[h_i] for h_i in range(HEADS)], axis=-1)   # (SEQ, H)

    attn_out = (jnp.dot(ctx.astype(jnp.bfloat16), ao_w_ref[0],
                        preferred_element_type=jnp.float32) + ao_b_ref[0])
    h = _layernorm(h + attn_out, ln1_g_ref[0], ln1_b_ref[0])

    # ---- feed-forward (bf16 MXU inputs, f32 elementwise) ----
    inter = _gelu_tanh(
        jnp.dot(h.astype(jnp.bfloat16), i_w_ref[0],
                preferred_element_type=jnp.float32) + i_b_ref[0])
    ffn_out = (jnp.dot(inter.astype(jnp.bfloat16), o_w_ref[0],
                       preferred_element_type=jnp.float32) + o_b_ref[0])
    h = _layernorm(h + ffn_out, ln2_g_ref[0], ln2_b_ref[0])
    h_scratch[...] = h

    # Last layer: pooler (tanh) + classifier fused into the kernel tail.
    @pl.when(layer == pl.num_programs(1) - 1)
    def _():
        cls_row = h[0:1, :]                               # CLS token of this batch block
        pooled = jnp.tanh(
            jnp.dot(cls_row.astype(jnp.bfloat16), pool_w_ref[...],
                    preferred_element_type=jnp.float32) + pool_b_ref[...])
        logits = (jnp.dot(pooled.astype(jnp.bfloat16), cls_w_ref[...],
                          preferred_element_type=jnp.float32) + cls_b_ref[...])
        logits_ref[...] = logits.reshape(1, 1, NUM_CLASSES).astype(logits_ref.dtype)


def _const_spec(shape):
    zeros = (0,) * len(shape)
    return pl.BlockSpec(shape, lambda b, l: zeros)


def _batch_spec(shape):  # leading block axis indexed by the batch grid dim
    zeros = (0,) * (len(shape) - 1)
    return pl.BlockSpec(shape, lambda b, l: (b,) + zeros)


def _layer_spec(shape):  # `shape` excludes the leading LAYERS dim
    zeros = (0,) * len(shape)
    return pl.BlockSpec((1,) + shape, lambda b, l: (l,) + zeros)


def bert_encoder_classify(params, emb, bias_full):
    H, F, C = HIDDEN, FFN, NUM_CLASSES
    grid_spec = pltpu.PrefetchScalarGridSpec(
        num_scalar_prefetch=0,
        grid=(BATCH, LAYERS),              # batch: parallel, layer: carried state
        in_specs=[
            _batch_spec((SEQ, H)),         # emb (word+pos+type sum), per-batch rows
            _batch_spec((1, SEQ, SEQ)),    # additive key-mask slab, per batch
            _const_spec((1, H)),           # emb_ln_g
            _const_spec((1, H)),           # emb_ln_b
            _layer_spec((H, 3 * H)),       # qkv_w  (bf16, Q cols pre-scaled)
            _layer_spec((1, 3 * H)),       # qkv_b
            _layer_spec((H, H)),           # ao_w   (bf16)
            _layer_spec((1, H)),           # ao_b
            _layer_spec((1, H)),           # ln1_g
            _layer_spec((1, H)),           # ln1_b
            _layer_spec((H, F)),           # i_w    (bf16)
            _layer_spec((1, F)),           # i_b
            _layer_spec((F, H)),           # o_w    (bf16)
            _layer_spec((1, H)),           # o_b
            _layer_spec((1, H)),           # ln2_g
            _layer_spec((1, H)),           # ln2_b
            _const_spec((H, H)),           # pool_w (bf16)
            _const_spec((1, H)),           # pool_b
            _const_spec((H, C)),           # cls_w  (bf16)
            _const_spec((1, C)),           # cls_b
        ],
        out_specs=_batch_spec((1, 1, C)),
        scratch_shapes=[
            pltpu.VMEM((SEQ, H), jnp.float32),   # activation slab (persists over layers)
        ],
    )
    logits = pl.pallas_call(
        _bert_fused_kernel,
        out_shape=jax.ShapeDtypeStruct((BATCH, 1, C), jnp.float32),
        grid_spec=grid_spec,
        compiler_params=pltpu.CompilerParams(
            dimension_semantics=("parallel", "arbitrary"),
            vmem_limit_bytes=32 * 1024 * 1024),   # explicit; ample headroom here
    )(emb, bias_full,
      params["emb_ln_g"], params["emb_ln_b"],
      params["qkv_w"], params["qkv_b"],
      params["ao_w"], params["ao_b"],
      params["ln1_g"], params["ln1_b"],
      params["i_w"], params["i_b"],
      params["o_w"], params["o_b"],
      params["ln2_g"], params["ln2_b"],
      params["pool_w"], params["pool_b"],
      params["cls_w"], params["cls_b"])
    return logits.reshape(BATCH, C)


# --------------------------- parameter construction --------------------------

def init_params(key):
    keys = iter(jax.random.split(key, 64))

    def dense(fan_in, fan_out):
        return 0.02 * jax.random.normal(next(keys), (fan_in, fan_out), jnp.float32)

    def bias_vec(n):
        return 0.02 * jax.random.normal(next(keys), (1, n), jnp.float32)

    params = {
        "word_emb": 0.02 * jax.random.normal(next(keys), (VOCAB, HIDDEN), jnp.float32),
        "pos_emb": 0.02 * jax.random.normal(next(keys), (MAX_POS, HIDDEN), jnp.float32),
        "type_emb": 0.02 * jax.random.normal(next(keys), (TYPE_VOCAB, HIDDEN), jnp.float32),
        "emb_ln_g": jnp.ones((1, HIDDEN), jnp.float32),
        "emb_ln_b": jnp.zeros((1, HIDDEN), jnp.float32),
        "pool_w": dense(HIDDEN, HIDDEN).astype(jnp.bfloat16),
        "pool_b": bias_vec(HIDDEN),
        "cls_w": dense(HIDDEN, NUM_CLASSES).astype(jnp.bfloat16),
        "cls_b": bias_vec(NUM_CLASSES),
    }

    stacked = {name: [] for name in
               ("qkv_w", "qkv_b", "ao_w", "ao_b", "ln1_g", "ln1_b",
                "i_w", "i_b", "o_w", "o_b", "ln2_g", "ln2_b")}
    for _ in range(LAYERS):
        qw, kw, vw = dense(HIDDEN, HIDDEN), dense(HIDDEN, HIDDEN), dense(HIDDEN, HIDDEN)
        qb, kb, vb = bias_vec(HIDDEN), bias_vec(HIDDEN), bias_vec(HIDDEN)
        # Fold 1/sqrt(head_dim) into the Q projection at construction time.
        stacked["qkv_w"].append(
            jnp.concatenate([qw * ATTN_SCALE, kw, vw], axis=1).astype(jnp.bfloat16))
        stacked["qkv_b"].append(
            jnp.concatenate([qb * ATTN_SCALE, kb, vb], axis=1))
        stacked["ao_w"].append(dense(HIDDEN, HIDDEN).astype(jnp.bfloat16))
        stacked["ao_b"].append(bias_vec(HIDDEN))
        stacked["ln1_g"].append(jnp.ones((1, HIDDEN), jnp.float32))
        stacked["ln1_b"].append(jnp.zeros((1, HIDDEN), jnp.float32))
        stacked["i_w"].append(dense(HIDDEN, FFN).astype(jnp.bfloat16))
        stacked["i_b"].append(bias_vec(FFN))
        stacked["o_w"].append(dense(FFN, HIDDEN).astype(jnp.bfloat16))
        stacked["o_b"].append(bias_vec(HIDDEN))
        stacked["ln2_g"].append(jnp.ones((1, HIDDEN), jnp.float32))
        stacked["ln2_b"].append(jnp.zeros((1, HIDDEN), jnp.float32))
    params.update({k: jnp.stack(v) for k, v in stacked.items()})
    return params


# ------------------------------- forward pass ---------------------------------

def bert_classifier_forward(params, input_ids, attention_mask=None,
                            token_type_ids=None, labels=None):
    B, S = input_ids.shape
    assert B == BATCH and S == SEQ
    if attention_mask is None:
        attention_mask = jnp.ones((B, S), jnp.int32)
    if token_type_ids is None:
        token_type_ids = jnp.zeros((B, S), jnp.int32)
    position_ids = jnp.broadcast_to(jnp.arange(S, dtype=jnp.int32)[None, :], (B, S))

    # Embedding gathers stay in JAX glue (data-dependent gather).
    emb = (params["word_emb"][input_ids]
           + params["pos_emb"][position_ids]
           + params["type_emb"][token_type_ids]).reshape(B * S, HIDDEN)
    # (B, S, S) additive key mask built once in the wrapper.
    key_bias = (1.0 - attention_mask.astype(jnp.float32)) * -10000.0
    bias_full = jnp.broadcast_to(key_bias[:, None, :], (B, S, S))

    # Entire BERT encoder + pooler + classifier in a single Pallas kernel.
    # nn.Dropout layers: identity in deterministic/eval mode.
    logits = bert_encoder_classify(params, emb, bias_full)
    outputs = (logits,)

    if labels is not None:
        if NUM_CLASSES == 1:
            loss = jnp.mean((logits.reshape(-1) - labels.reshape(-1).astype(jnp.float32)) ** 2)
        else:
            logp = jax.nn.log_softmax(logits.reshape(-1, NUM_CLASSES), axis=-1)
            picked = jnp.take_along_axis(logp, labels.reshape(-1, 1), axis=-1)
            loss = -jnp.mean(picked)
        outputs = (loss,) + outputs
    return outputs


# -------------------------- pure-JAX reference check --------------------------

def reference_logits(params, input_ids, attention_mask, token_type_ids):
    B, S = input_ids.shape
    pos = jnp.broadcast_to(jnp.arange(S, dtype=jnp.int32)[None, :], (B, S))
    emb = (params["word_emb"][input_ids] + params["pos_emb"][pos]
           + params["type_emb"][token_type_ids]).reshape(B * S, HIDDEN)
    h = _layernorm(emb, params["emb_ln_g"], params["emb_ln_b"])
    bias = (1.0 - attention_mask.astype(jnp.float32)) * -10000.0

    def bdot(x, w):
        return jnp.dot(x.astype(jnp.bfloat16), w.astype(jnp.bfloat16),
                       preferred_element_type=jnp.float32)

    def heads(x):
        return x.reshape(B, S, HEADS, HEAD_DIM).transpose(0, 2, 1, 3).astype(jnp.bfloat16)

    for l in range(LAYERS):
        qkv = bdot(h, params["qkv_w"][l]) + params["qkv_b"][l]
        q, k, v = jnp.split(qkv, 3, axis=1)
        # attention scale already folded into the Q projection params.
        s = (jnp.einsum("bhqd,bhkd->bhqk", heads(q), heads(k),
                        preferred_element_type=jnp.float32)
             + bias[:, None, None, :])
        p = jax.nn.softmax(s, axis=-1)
        ctx = (jnp.einsum("bhqk,bhkd->bhqd", p.astype(jnp.bfloat16), heads(v),
                          preferred_element_type=jnp.float32)
               .transpose(0, 2, 1, 3).reshape(B * S, HIDDEN))
        h = _layernorm(h + bdot(ctx, params["ao_w"][l]) + params["ao_b"][l],
                       params["ln1_g"][l], params["ln1_b"][l])
        inter = _gelu_tanh(bdot(h, params["i_w"][l]) + params["i_b"][l])
        h = _layernorm(h + bdot(inter, params["o_w"][l]) + params["o_b"][l],
                       params["ln2_g"][l], params["ln2_b"][l])
    cls_tok = h.reshape(B, S, HIDDEN)[:, 0, :]
    pooled = jnp.tanh(bdot(cls_tok, params["pool_w"]) + params["pool_b"])
    return bdot(pooled, params["cls_w"]) + params["cls_b"]


# ----------------------------------- main -------------------------------------

if __name__ == "__main__":
    key = jax.random.PRNGKey(0)
    pkey, ikey, lkey = jax.random.split(key, 3)

    params = init_params(pkey)
    input_ids = jax.random.randint(ikey, (BATCH, SEQ), 0, VOCAB, dtype=jnp.int32)
    attention_mask = jnp.ones((BATCH, SEQ), jnp.int32).at[1, SEQ - 2:].set(0)
    token_type_ids = jnp.zeros((BATCH, SEQ), jnp.int32)
    labels = jax.random.randint(lkey, (BATCH,), 0, NUM_CLASSES, dtype=jnp.int32)

    fwd = jax.jit(bert_classifier_forward)
    loss, logits = fwd(params, input_ids, attention_mask, token_type_ids, labels)
    jax.block_until_ready((loss, logits))

    # correctness check vs a pure-JAX reference that mirrors the bf16 matmuls
    ref = reference_logits(params, input_ids, attention_mask, token_type_ids)
    np.testing.assert_allclose(np.asarray(logits), np.asarray(ref),
                               rtol=2e-2, atol=2e-3)

    assert logits.shape == (BATCH, NUM_CLASSES)
    assert loss.shape == ()
    print("KERNEL_OK")
</pallas_src>

<mosaic_0001>
module attributes {stable_mosaic.version = 11 : i64} {
  func.func @_bert_fused_kernel(%arg0: i32, %arg1: i32, %arg2: memref<8x32xf32, #tpu.memory_space<vmem>>, %arg3: memref<1x8x8xf32, #tpu.memory_space<vmem>>, %arg4: memref<1x32xf32, #tpu.memory_space<vmem>>, %arg5: memref<1x32xf32, #tpu.memory_space<vmem>>, %arg6: memref<1x32x96xbf16, #tpu.memory_space<vmem>>, %arg7: memref<1x1x96xf32, #tpu.memory_space<vmem>>, %arg8: memref<1x32x32xbf16, #tpu.memory_space<vmem>>, %arg9: memref<1x1x32xf32, #tpu.memory_space<vmem>>, %arg10: memref<1x1x32xf32, #tpu.memory_space<vmem>>, %arg11: memref<1x1x32xf32, #tpu.memory_space<vmem>>, %arg12: memref<1x32x64xbf16, #tpu.memory_space<vmem>>, %arg13: memref<1x1x64xf32, #tpu.memory_space<vmem>>, %arg14: memref<1x64x32xbf16, #tpu.memory_space<vmem>>, %arg15: memref<1x1x32xf32, #tpu.memory_space<vmem>>, %arg16: memref<1x1x32xf32, #tpu.memory_space<vmem>>, %arg17: memref<1x1x32xf32, #tpu.memory_space<vmem>>, %arg18: memref<32x32xbf16, #tpu.memory_space<vmem>>, %arg19: memref<1x32xf32, #tpu.memory_space<vmem>>, %arg20: memref<32x3xbf16, #tpu.memory_space<vmem>>, %arg21: memref<1x3xf32, #tpu.memory_space<vmem>>, %arg22: memref<1x1x3xf32, #tpu.memory_space<vmem>>, %arg23: memref<8x32xf32, #tpu.memory_space<vmem>>) attributes {dimension_semantics = [#tpu.dimension_semantics<parallel>, #tpu.dimension_semantics<arbitrary>], iteration_bounds = array<i64: 2, 2>, scalar_prefetch = 0 : i64, scratch_operands = 1 : i64, tpu.core_type = #tpu.core_type<tc>, window_params = [{transform_indices = @transform_0, window_bounds = array<i64: 8, 32>}, {transform_indices = @transform_1, window_bounds = array<i64: 1, 8, 8>}, {pipeline_mode = #tpu.pipeline_mode<synchronous>, transform_indices = @transform_2, window_bounds = array<i64: 1, 32>}, {pipeline_mode = #tpu.pipeline_mode<synchronous>, transform_indices = @transform_3, window_bounds = array<i64: 1, 32>}, {transform_indices = @transform_4, window_bounds = array<i64: 1, 32, 96>}, {transform_indices = @transform_5, window_bounds = array<i64: 1, 1, 96>}, {transform_indices = @transform_6, window_bounds = array<i64: 1, 32, 32>}, {transform_indices = @transform_7, window_bounds = array<i64: 1, 1, 32>}, {transform_indices = @transform_8, window_bounds = array<i64: 1, 1, 32>}, {transform_indices = @transform_9, window_bounds = array<i64: 1, 1, 32>}, {transform_indices = @transform_10, window_bounds = array<i64: 1, 32, 64>}, {transform_indices = @transform_11, window_bounds = array<i64: 1, 1, 64>}, {transform_indices = @transform_12, window_bounds = array<i64: 1, 64, 32>}, {transform_indices = @transform_13, window_bounds = array<i64: 1, 1, 32>}, {transform_indices = @transform_14, window_bounds = array<i64: 1, 1, 32>}, {transform_indices = @transform_15, window_bounds = array<i64: 1, 1, 32>}, {pipeline_mode = #tpu.pipeline_mode<synchronous>, transform_indices = @transform_16, window_bounds = array<i64: 32, 32>}, {pipeline_mode = #tpu.pipeline_mode<synchronous>, transform_indices = @transform_17, window_bounds = array<i64: 1, 32>}, {pipeline_mode = #tpu.pipeline_mode<synchronous>, transform_indices = @transform_18, window_bounds = array<i64: 32, 3>}, {pipeline_mode = #tpu.pipeline_mode<synchronous>, transform_indices = @transform_19, window_bounds = array<i64: 1, 3>}, {transform_indices = @transform_20, window_bounds = array<i64: 1, 1, 3>}]} {
    %c0_i32 = arith.constant 0 : i32
    %0 = arith.cmpi eq, %arg1, %c0_i32 : i32
    %1 = arith.extui %0 : i1 to i32
    %c0_i32_0 = arith.constant 0 : i32
    %2 = arith.cmpi ne, %1, %c0_i32_0 : i32
    scf.if %2 {
      %c0_65 = arith.constant 0 : index
      %c0_66 = arith.constant 0 : index
      %145 = vector.load %arg2[%c0_65, %c0_66] : memref<8x32xf32, #tpu.memory_space<vmem>>, vector<8x32xf32>
      %c0_67 = arith.constant 0 : index
      %c0_68 = arith.constant 0 : index
      %146 = vector.load %arg4[%c0_67, %c0_68] : memref<1x32xf32, #tpu.memory_space<vmem>>, vector<1x32xf32>
      %c0_69 = arith.constant 0 : index
      %c0_70 = arith.constant 0 : index
      %147 = vector.load %arg5[%c0_69, %c0_70] : memref<1x32xf32, #tpu.memory_space<vmem>>, vector<1x32xf32>
      %cst_71 = arith.constant dense<0.000000e+00> : vector<8xf32>
      %148 = vector.multi_reduction <add>, %145, %cst_71 [1] : vector<8x32xf32> to vector<8xf32>
      %149 = vector.shape_cast %148 : vector<8xf32> to vector<8x1xf32>
      %cst_72 = arith.constant 3.200000e+01 : f32
      %150 = vector.broadcast %cst_72 : f32 to vector<8x1xf32>
      %151 = arith.divf %149, %150 : vector<8x1xf32>
      %152 = vector.broadcast %151 : vector<8x1xf32> to vector<8x32xf32>
      %153 = arith.subf %145, %152 : vector<8x32xf32>
      %154 = arith.mulf %153, %153 : vector<8x32xf32>
      %cst_73 = arith.constant dense<0.000000e+00> : vector<8xf32>
      %155 = vector.multi_reduction <add>, %154, %cst_73 [1] : vector<8x32xf32> to vector<8xf32>
      %156 = vector.shape_cast %155 : vector<8xf32> to vector<8x1xf32>
      %cst_74 = arith.constant 3.200000e+01 : f32
      %157 = vector.broadcast %cst_74 : f32 to vector<8x1xf32>
      %158 = arith.divf %156, %157 : vector<8x1xf32>
      %cst_75 = arith.constant 9.99999996E-13 : f32
      %159 = vector.broadcast %cst_75 : f32 to vector<8x1xf32>
      %160 = arith.addf %158, %159 : vector<8x1xf32>
      %161 = math.rsqrt %160 : vector<8x1xf32>
      %162 = vector.broadcast %151 : vector<8x1xf32> to vector<8x32xf32>
      %163 = arith.subf %145, %162 : vector<8x32xf32>
      %164 = vector.broadcast %161 : vector<8x1xf32> to vector<8x32xf32>
      %165 = arith.mulf %163, %164 : vector<8x32xf32>
      %166 = vector.broadcast %146 : vector<1x32xf32> to vector<8x32xf32>
      %167 = arith.mulf %165, %166 : vector<8x32xf32>
      %168 = vector.broadcast %147 : vector<1x32xf32> to vector<8x32xf32>
      %169 = arith.addf %167, %168 : vector<8x32xf32>
      %c0_76 = arith.constant 0 : index
      %c0_77 = arith.constant 0 : index
      %170 = vector.load %arg23[%c0_76, %c0_77] : memref<8x32xf32, #tpu.memory_space<vmem>>, vector<8x32xf32>
      tpu.vector_store %arg23[%c0_76, %c0_77], %169 {strides = array<i32>} : memref<8x32xf32, #tpu.memory_space<vmem>>, vector<8x32xf32>,
    } else {
    }
    %c0 = arith.constant 0 : index
    %c0_1 = arith.constant 0 : index
    %3 = vector.load %arg23[%c0, %c0_1] : memref<8x32xf32, #tpu.memory_space<vmem>>, vector<8x32xf32>
    %4 = arith.truncf %3 : vector<8x32xf32> to vector<8x32xbf16>
    %c0_2 = arith.constant 0 : index
    %c0_3 = arith.constant 0 : index
    %c0_4 = arith.constant 0 : index
    %5 = vector.load %arg6[%c0_2, %c0_3, %c0_4] : memref<1x32x96xbf16, #tpu.memory_space<vmem>>, vector<1x32x96xbf16>
    %6 = vector.shape_cast %5 : vector<1x32x96xbf16> to vector<32x96xbf16>
    %cst = arith.constant dense<0.000000e+00> : vector<8x96xf32>
    %7 = tpu.matmul %4, %6, %cst {dimension_numbers = #tpu.dot_dimension_numbers<[1], [0], [0], [1], [0, 0, 1, 1], [], []>} : vector<8x32xbf16>, vector<32x96xbf16>, vector<8x96xf32> -> vector<8x96xf32>
    %c0_5 = arith.constant 0 : index
    %c0_6 = arith.constant 0 : index
    %c0_7 = arith.constant 0 : index
    %8 = vector.load %arg7[%c0_5, %c0_6, %c0_7] : memref<1x1x96xf32, #tpu.memory_space<vmem>>, vector<1x1x96xf32>
    %9 = vector.shape_cast %8 : vector<1x1x96xf32> to vector<1x96xf32>
    %10 = vector.broadcast %9 : vector<1x96xf32> to vector<8x96xf32>
    %11 = arith.addf %7, %10 : vector<8x96xf32>
    %12 = arith.truncf %11 : vector<8x96xf32> to vector<8x96xbf16>
    %13 = vector.extract_strided_slice %12 {offsets = [0, 0], sizes = [8, 16], strides = [1, 1]} : vector<8x96xbf16> to vector<8x16xbf16>
    %14 = vector.extract_strided_slice %12 {offsets = [0, 16], sizes = [8, 16], strides = [1, 1]} : vector<8x96xbf16> to vector<8x16xbf16>
    %15 = vector.shape_cast %13 : vector<8x16xbf16> to vector<1x8x16xbf16>
    %16 = vector.shape_cast %14 : vector<8x16xbf16> to vector<1x8x16xbf16>
    %17 = tpu.concatenate %15, %16 in 0 : vector<1x8x16xbf16>, vector<1x8x16xbf16> -> vector<2x8x16xbf16>
    %18 = vector.extract_strided_slice %12 {offsets = [0, 32], sizes = [8, 16], strides = [1, 1]} : vector<8x96xbf16> to vector<8x16xbf16>
    %19 = vector.extract_strided_slice %12 {offsets = [0, 48], sizes = [8, 16], strides = [1, 1]} : vector<8x96xbf16> to vector<8x16xbf16>
    %20 = vector.shape_cast %18 : vector<8x16xbf16> to vector<1x8x16xbf16>
    %21 = vector.shape_cast %19 : vector<8x16xbf16> to vector<1x8x16xbf16>
    %22 = tpu.concatenate %20, %21 in 0 : vector<1x8x16xbf16>, vector<1x8x16xbf16> -> vector<2x8x16xbf16>
    %23 = vector.extract_strided_slice %12 {offsets = [0, 64], sizes = [8, 16], strides = [1, 1]} : vector<8x96xbf16> to vector<8x16xbf16>
    %24 = vector.extract_strided_slice %12 {offsets = [0, 80], sizes = [8, 16], strides = [1, 1]} : vector<8x96xbf16> to vector<8x16xbf16>
    %25 = vector.shape_cast %23 : vector<8x16xbf16> to vector<1x8x16xbf16>
    %26 = vector.shape_cast %24 : vector<8x16xbf16> to vector<1x8x16xbf16>
    %27 = tpu.concatenate %25, %26 in 0 : vector<1x8x16xbf16>, vector<1x8x16xbf16> -> vector<2x8x16xbf16>
    "tpu.trace_start"() <{level = 10 : i32, message = "hqd,hkd->hqk"}> : () -> ()
    %cst_8 = arith.constant dense<0.000000e+00> : vector<2x8x8xf32>
    %28 = tpu.matmul %17, %22, %cst_8 {dimension_numbers = #tpu.dot_dimension_numbers<[2], [2], [1], [1], [0, 0, 0, 1, 1, 1], [0], [0]>} : vector<2x8x16xbf16>, vector<2x8x16xbf16>, vector<2x8x8xf32> -> vector<2x8x8xf32>
    "tpu.trace_stop"() : () -> ()
    %c0_9 = arith.constant 0 : index
    %c0_10 = arith.constant 0 : index
    %c0_11 = arith.constant 0 : index
    %29 = vector.load %arg3[%c0_9, %c0_10, %c0_11] : memref<1x8x8xf32, #tpu.memory_space<vmem>>, vector<1x8x8xf32>
    %30 = vector.shape_cast %29 : vector<1x8x8xf32> to vector<8x8xf32>
    %31 = vector.shape_cast %30 : vector<8x8xf32> to vector<1x8x8xf32>
    %32 = vector.broadcast %31 : vector<1x8x8xf32> to vector<2x8x8xf32>
    %33 = arith.addf %28, %32 : vector<2x8x8xf32>
    %cst_12 = arith.constant dense<0xFF800000> : vector<2x8xf32>
    %34 = vector.multi_reduction <maximumf>, %33, %cst_12 [2] : vector<2x8x8xf32> to vector<2x8xf32>
    %35 = vector.shape_cast %34 : vector<2x8xf32> to vector<2x8x1xf32>
    %36 = vector.broadcast %35 : vector<2x8x1xf32> to vector<2x8x8xf32>
    %37 = arith.subf %33, %36 : vector<2x8x8xf32>
    %38 = math.exp %37 : vector<2x8x8xf32>
    %cst_13 = arith.constant dense<0.000000e+00> : vector<2x8xf32>
    %39 = vector.multi_reduction <add>, %38, %cst_13 [2] : vector<2x8x8xf32> to vector<2x8xf32>
    %40 = vector.shape_cast %39 : vector<2x8xf32> to vector<2x8x1xf32>
    %41 = vector.broadcast %40 : vector<2x8x1xf32> to vector<2x8x8xf32>
    %42 = arith.divf %38, %41 : vector<2x8x8xf32>
    %43 = arith.truncf %42 : vector<2x8x8xf32> to vector<2x8x8xbf16>
    "tpu.trace_start"() <{level = 10 : i32, message = "hqk,hkd->hqd"}> : () -> ()
    %cst_14 = arith.constant dense<0.000000e+00> : vector<2x8x16xf32>
    %44 = tpu.matmul %43, %27, %cst_14 {dimension_numbers = #tpu.dot_dimension_numbers<[2], [1], [1], [2], [0, 0, 0, 1, 1, 2], [0], [0]>} : vector<2x8x8xbf16>, vector<2x8x16xbf16>, vector<2x8x16xf32> -> vector<2x8x16xf32>
    "tpu.trace_stop"() : () -> ()
    %45 = vector.extract_strided_slice %44 {offsets = [0, 0, 0], sizes = [1, 8, 16], strides = [1, 1, 1]} : vector<2x8x16xf32> to vector<1x8x16xf32>
    %46 = vector.shape_cast %45 : vector<1x8x16xf32> to vector<8x16xf32>
    %47 = vector.extract_strided_slice %44 {offsets = [1, 0, 0], sizes = [1, 8, 16], strides = [1, 1, 1]} : vector<2x8x16xf32> to vector<1x8x16xf32>
    %48 = vector.shape_cast %47 : vector<1x8x16xf32> to vector<8x16xf32>
    %49 = tpu.concatenate %46, %48 in 1 : vector<8x16xf32>, vector<8x16xf32> -> vector<8x32xf32>
    %50 = arith.truncf %49 : vector<8x32xf32> to vector<8x32xbf16>
    %c0_15 = arith.constant 0 : index
    %c0_16 = arith.constant 0 : index
    %c0_17 = arith.constant 0 : index
    %51 = vector.load %arg8[%c0_15, %c0_16, %c0_17] : memref<1x32x32xbf16, #tpu.memory_space<vmem>>, vector<1x32x32xbf16>
    %52 = vector.shape_cast %51 : vector<1x32x32xbf16> to vector<32x32xbf16>
    %cst_18 = arith.constant dense<0.000000e+00> : vector<8x32xf32>
    %53 = tpu.matmul %50, %52, %cst_18 {dimension_numbers = #tpu.dot_dimension_numbers<[1], [0], [0], [1], [0, 0, 1, 1], [], []>} : vector<8x32xbf16>, vector<32x32xbf16>, vector<8x32xf32> -> vector<8x32xf32>
    %c0_19 = arith.constant 0 : index
    %c0_20 = arith.constant 0 : index
    %c0_21 = arith.constant 0 : index
    %54 = vector.load %arg9[%c0_19, %c0_20, %c0_21] : memref<1x1x32xf32, #tpu.memory_space<vmem>>, vector<1x1x32xf32>
    %55 = vector.shape_cast %54 : vector<1x1x32xf32> to vector<1x32xf32>
    %56 = vector.broadcast %55 : vector<1x32xf32> to vector<8x32xf32>
    %57 = arith.addf %53, %56 : vector<8x32xf32>
    %58 = arith.addf %3, %57 : vector<8x32xf32>
    %c0_22 = arith.constant 0 : index
    %c0_23 = arith.constant 0 : index
    %c0_24 = arith.constant 0 : index
    %59 = vector.load %arg10[%c0_22, %c0_23, %c0_24] : memref<1x1x32xf32, #tpu.memory_space<vmem>>, vector<1x1x32xf32>
    %60 = vector.shape_cast %59 : vector<1x1x32xf32> to vector<1x32xf32>
    %c0_25 = arith.constant 0 : index
    %c0_26 = arith.constant 0 : index
    %c0_27 = arith.constant 0 : index
    %61 = vector.load %arg11[%c0_25, %c0_26, %c0_27] : memref<1x1x32xf32, #tpu.memory_space<vmem>>, vector<1x1x32xf32>
    %62 = vector.shape_cast %61 : vector<1x1x32xf32> to vector<1x32xf32>
    %cst_28 = arith.constant dense<0.000000e+00> : vector<8xf32>
    %63 = vector.multi_reduction <add>, %58, %cst_28 [1] : vector<8x32xf32> to vector<8xf32>
    %64 = vector.shape_cast %63 : vector<8xf32> to vector<8x1xf32>
    %cst_29 = arith.constant 3.200000e+01 : f32
    %65 = vector.broadcast %cst_29 : f32 to vector<8x1xf32>
    %66 = arith.divf %64, %65 : vector<8x1xf32>
    %67 = vector.broadcast %66 : vector<8x1xf32> to vector<8x32xf32>
    %68 = arith.subf %58, %67 : vector<8x32xf32>
    %69 = arith.mulf %68, %68 : vector<8x32xf32>
    %cst_30 = arith.constant dense<0.000000e+00> : vector<8xf32>
    %70 = vector.multi_reduction <add>, %69, %cst_30 [1] : vector<8x32xf32> to vector<8xf32>
    %71 = vector.shape_cast %70 : vector<8xf32> to vector<8x1xf32>
    %cst_31 = arith.constant 3.200000e+01 : f32
    %72 = vector.broadcast %cst_31 : f32 to vector<8x1xf32>
    %73 = arith.divf %71, %72 : vector<8x1xf32>
    %cst_32 = arith.constant 9.99999996E-13 : f32
    %74 = vector.broadcast %cst_32 : f32 to vector<8x1xf32>
    %75 = arith.addf %73, %74 : vector<8x1xf32>
    %76 = math.rsqrt %75 : vector<8x1xf32>
    %77 = vector.broadcast %66 : vector<8x1xf32> to vector<8x32xf32>
    %78 = arith.subf %58, %77 : vector<8x32xf32>
    %79 = vector.broadcast %76 : vector<8x1xf32> to vector<8x32xf32>
    %80 = arith.mulf %78, %79 : vector<8x32xf32>
    %81 = vector.broadcast %60 : vector<1x32xf32> to vector<8x32xf32>
    %82 = arith.mulf %80, %81 : vector<8x32xf32>
    %83 = vector.broadcast %62 : vector<1x32xf32> to vector<8x32xf32>
    %84 = arith.addf %82, %83 : vector<8x32xf32>
    %85 = arith.truncf %84 : vector<8x32xf32> to vector<8x32xbf16>
    %c0_33 = arith.constant 0 : index
    %c0_34 = arith.constant 0 : index
    %c0_35 = arith.constant 0 : index
    %86 = vector.load %arg12[%c0_33, %c0_34, %c0_35] : memref<1x32x64xbf16, #tpu.memory_space<vmem>>, vector<1x32x64xbf16>
    %87 = vector.shape_cast %86 : vector<1x32x64xbf16> to vector<32x64xbf16>
    %cst_36 = arith.constant dense<0.000000e+00> : vector<8x64xf32>
    %88 = tpu.matmul %85, %87, %cst_36 {dimension_numbers = #tpu.dot_dimension_numbers<[1], [0], [0], [1], [0, 0, 1, 1], [], []>} : vector<8x32xbf16>, vector<32x64xbf16>, vector<8x64xf32> -> vector<8x64xf32>
    %c0_37 = arith.constant 0 : index
    %c0_38 = arith.constant 0 : index
    %c0_39 = arith.constant 0 : index
    %89 = vector.load %arg13[%c0_37, %c0_38, %c0_39] : memref<1x1x64xf32, #tpu.memory_space<vmem>>, vector<1x1x64xf32>
    %90 = vector.shape_cast %89 : vector<1x1x64xf32> to vector<1x64xf32>
    %91 = vector.broadcast %90 : vector<1x64xf32> to vector<8x64xf32>
    %92 = arith.addf %88, %91 : vector<8x64xf32>
    %cst_40 = arith.constant 5.000000e-01 : f32
    %93 = vector.broadcast %cst_40 : f32 to vector<8x64xf32>
    %94 = arith.mulf %93, %92 : vector<8x64xf32>
    %cst_41 = arith.constant 4.471500e-02 : f32
    %95 = vector.broadcast %cst_41 : f32 to vector<8x64xf32>
    %96 = arith.mulf %95, %92 : vector<8x64xf32>
    %97 = arith.mulf %96, %92 : vector<8x64xf32>
    %98 = arith.mulf %97, %92 : vector<8x64xf32>
    %99 = arith.addf %92, %98 : vector<8x64xf32>
    %cst_42 = arith.constant 0.797884583 : f32
    %100 = vector.broadcast %cst_42 : f32 to vector<8x64xf32>
    %101 = arith.mulf %100, %99 : vector<8x64xf32>
    %102 = math.tanh %101 : vector<8x64xf32>
    %cst_43 = arith.constant 1.000000e+00 : f32
    %103 = vector.broadcast %cst_43 : f32 to vector<8x64xf32>
    %104 = arith.addf %103, %102 : vector<8x64xf32>
    %105 = arith.mulf %94, %104 : vector<8x64xf32>
    %106 = arith.truncf %105 : vector<8x64xf32> to vector<8x64xbf16>
    %c0_44 = arith.constant 0 : index
    %c0_45 = arith.constant 0 : index
    %c0_46 = arith.constant 0 : index
    %107 = vector.load %arg14[%c0_44, %c0_45, %c0_46] : memref<1x64x32xbf16, #tpu.memory_space<vmem>>, vector<1x64x32xbf16>
    %108 = vector.shape_cast %107 : vector<1x64x32xbf16> to vector<64x32xbf16>
    %cst_47 = arith.constant dense<0.000000e+00> : vector<8x32xf32>
    %109 = tpu.matmul %106, %108, %cst_47 {dimension_numbers = #tpu.dot_dimension_numbers<[1], [0], [0], [1], [0, 0, 1, 1], [], []>} : vector<8x64xbf16>, vector<64x32xbf16>, vector<8x32xf32> -> vector<8x32xf32>
    %c0_48 = arith.constant 0 : index
    %c0_49 = arith.constant 0 : index
    %c0_50 = arith.constant 0 : index
    %110 = vector.load %arg15[%c0_48, %c0_49, %c0_50] : memref<1x1x32xf32, #tpu.memory_space<vmem>>, vector<1x1x32xf32>
    %111 = vector.shape_cast %110 : vector<1x1x32xf32> to vector<1x32xf32>
    %112 = vector.broadcast %111 : vector<1x32xf32> to vector<8x32xf32>
    %113 = arith.addf %109, %112 : vector<8x32xf32>
    %114 = arith.addf %84, %113 : vector<8x32xf32>
    %c0_51 = arith.constant 0 : index
    %c0_52 = arith.constant 0 : index
    %c0_53 = arith.constant 0 : index
    %115 = vector.load %arg16[%c0_51, %c0_52, %c0_53] : memref<1x1x32xf32, #tpu.memory_space<vmem>>, vector<1x1x32xf32>
    %116 = vector.shape_cast %115 : vector<1x1x32xf32> to vector<1x32xf32>
    %c0_54 = arith.constant 0 : index
    %c0_55 = arith.constant 0 : index
    %c0_56 = arith.constant 0 : index
    %117 = vector.load %arg17[%c0_54, %c0_55, %c0_56] : memref<1x1x32xf32, #tpu.memory_space<vmem>>, vector<1x1x32xf32>
    %118 = vector.shape_cast %117 : vector<1x1x32xf32> to vector<1x32xf32>
    %cst_57 = arith.constant dense<0.000000e+00> : vector<8xf32>
    %119 = vector.multi_reduction <add>, %114, %cst_57 [1] : vector<8x32xf32> to vector<8xf32>
    %120 = vector.shape_cast %119 : vector<8xf32> to vector<8x1xf32>
    %cst_58 = arith.constant 3.200000e+01 : f32
    %121 = vector.broadcast %cst_58 : f32 to vector<8x1xf32>
    %122 = arith.divf %120, %121 : vector<8x1xf32>
    %123 = vector.broadcast %122 : vector<8x1xf32> to vector<8x32xf32>
    %124 = arith.subf %114, %123 : vector<8x32xf32>
    %125 = arith.mulf %124, %124 : vector<8x32xf32>
    %cst_59 = arith.constant dense<0.000000e+00> : vector<8xf32>
    %126 = vector.multi_reduction <add>, %125, %cst_59 [1] : vector<8x32xf32> to vector<8xf32>
    %127 = vector.shape_cast %126 : vector<8xf32> to vector<8x1xf32>
    %cst_60 = arith.constant 3.200000e+01 : f32
    %128 = vector.broadcast %cst_60 : f32 to vector<8x1xf32>
    %129 = arith.divf %127, %128 : vector<8x1xf32>
    %cst_61 = arith.constant 9.99999996E-13 : f32
    %130 = vector.broadcast %cst_61 : f32 to vector<8x1xf32>
    %131 = arith.addf %129, %130 : vector<8x1xf32>
    %132 = math.rsqrt %131 : vector<8x1xf32>
    %133 = vector.broadcast %122 : vector<8x1xf32> to vector<8x32xf32>
    %134 = arith.subf %114, %133 : vector<8x32xf32>
    %135 = vector.broadcast %132 : vector<8x1xf32> to vector<8x32xf32>
    %136 = arith.mulf %134, %135 : vector<8x32xf32>
    %137 = vector.broadcast %116 : vector<1x32xf32> to vector<8x32xf32>
    %138 = arith.mulf %136, %137 : vector<8x32xf32>
    %139 = vector.broadcast %118 : vector<1x32xf32> to vector<8x32xf32>
    %140 = arith.addf %138, %139 : vector<8x32xf32>
    %c0_62 = arith.constant 0 : index
    %c0_63 = arith.constant 0 : index
    %141 = vector.load %arg23[%c0_62, %c0_63] : memref<8x32xf32, #tpu.memory_space<vmem>>, vector<8x32xf32>
    tpu.vector_store %arg23[%c0_62, %c0_63], %140 {strides = array<i32>} : memref<8x32xf32, #tpu.memory_space<vmem>>, vector<8x32xf32>,
    %c1_i32 = arith.constant 1 : i32
    %142 = arith.cmpi eq, %arg1, %c1_i32 : i32
    %143 = arith.extui %142 : i1 to i32
    %c0_i32_64 = arith.constant 0 : i32
    %144 = arith.cmpi ne, %143, %c0_i32_64 : i32
    scf.if %144 {
      %145 = vector.extract_strided_slice %140 {offsets = [0, 0], sizes = [1, 32], strides = [1, 1]} : vector<8x32xf32> to vector<1x32xf32>
      %146 = arith.truncf %145 : vector<1x32xf32> to vector<1x32xbf16>
      %c0_65 = arith.constant 0 : index
      %c0_66 = arith.constant 0 : index
      %147 = vector.load %arg18[%c0_65, %c0_66] : memref<32x32xbf16, #tpu.memory_space<vmem>>, vector<32x32xbf16>
      %cst_67 = arith.constant dense<0.000000e+00> : vector<1x32xf32>
      %148 = tpu.matmul %146, %147, %cst_67 {dimension_numbers = #tpu.dot_dimension_numbers<[1], [0], [0], [1], [0, 0, 1, 1], [], []>} : vector<1x32xbf16>, vector<32x32xbf16>, vector<1x32xf32> -> vector<1x32xf32>
      %c0_68 = arith.constant 0 : index
      %c0_69 = arith.constant 0 : index
      %149 = vector.load %arg19[%c0_68, %c0_69] : memref<1x32xf32, #tpu.memory_space<vmem>>, vector<1x32xf32>
      %150 = arith.addf %148, %149 : vector<1x32xf32>
      %151 = math.tanh %150 : vector<1x32xf32>
      %152 = arith.truncf %151 : vector<1x32xf32> to vector<1x32xbf16>
      %c0_70 = arith.constant 0 : index
      %c0_71 = arith.constant 0 : index
      %153 = vector.load %arg20[%c0_70, %c0_71] : memref<32x3xbf16, #tpu.memory_space<vmem>>, vector<32x3xbf16>
      %cst_72 = arith.constant dense<0.000000e+00> : vector<1x3xf32>
      %154 = tpu.matmul %152, %153, %cst_72 {dimension_numbers = #tpu.dot_dimension_numbers<[1], [0], [0], [1], [0, 0, 1, 1], [], []>} : vector<1x32xbf16>, vector<32x3xbf16>, vector<1x3xf32> -> vector<1x3xf32>
      %c0_73 = arith.constant 0 : index
      %c0_74 = arith.constant 0 : index
      %155 = vector.load %arg21[%c0_73, %c0_74] : memref<1x3xf32, #tpu.memory_space<vmem>>, vector<1x3xf32>
      %156 = arith.addf %154, %155 : vector<1x3xf32>
      %157 = vector.shape_cast %156 : vector<1x3xf32> to vector<1x1x3xf32>
      %c0_75 = arith.constant 0 : index
      %c0_76 = arith.constant 0 : index
      %c0_77 = arith.constant 0 : index
      %158 = vector.load %arg22[%c0_75, %c0_76, %c0_77] : memref<1x1x3xf32, #tpu.memory_space<vmem>>, vector<1x1x3xf32>
      tpu.vector_store %arg22[%c0_75, %c0_76, %c0_77], %157 {strides = array<i32>} : memref<1x1x3xf32, #tpu.memory_space<vmem>>, vector<1x1x3xf32>,
    } else {
    }
    return
  }
  func.func @transform_0(%arg0: i32, %arg1: i32) -> (i32, i32) {
    %c0_i32 = arith.constant 0 : i32
    %c0_i32_0 = arith.constant 0 : i32
    return %arg0, %c0_i32 : i32, i32
  }
  func.func @transform_1(%arg0: i32, %arg1: i32) -> (i32, i32, i32) {
    %c0_i32 = arith.constant 0 : i32
    %c0_i32_0 = arith.constant 0 : i32
    %c0_i32_1 = arith.constant 0 : i32
    return %arg0, %c0_i32, %c0_i32_0 : i32, i32, i32
  }
  func.func @transform_2(%arg0: i32, %arg1: i32) -> (i32, i32) {
    %c0_i32 = arith.constant 0 : i32
    %c0_i32_0 = arith.constant 0 : i32
    %c0_i32_1 = arith.constant 0 : i32
    return %c0_i32, %c0_i32_0 : i32, i32
  }
  func.func @transform_3(%arg0: i32, %arg1: i32) -> (i32, i32) {
    %c0_i32 = arith.constant 0 : i32
    %c0_i32_0 = arith.constant 0 : i32
    %c0_i32_1 = arith.constant 0 : i32
    return %c0_i32, %c0_i32_0 : i32, i32
  }
  func.func @transform_4(%arg0: i32, %arg1: i32) -> (i32, i32, i32) {
    %c0_i32 = arith.constant 0 : i32
    %c0_i32_0 = arith.constant 0 : i32
    %c0_i32_1 = arith.constant 0 : i32
    return %arg1, %c0_i32, %c0_i32_0 : i32, i32, i32
  }
  func.func @transform_5(%arg0: i32, %arg1: i32) -> (i32, i32, i32) {
    %c0_i32 = arith.constant 0 : i32
    %c0_i32_0 = arith.constant 0 : i32
    %c0_i32_1 = arith.constant 0 : i32
    return %arg1, %c0_i32, %c0_i32_0 : i32, i32, i32
  }
  func.func @transform_6(%arg0: i32, %arg1: i32) -> (i32, i32, i32) {
    %c0_i32 = arith.constant 0 : i32
    %c0_i32_0 = arith.constant 0 : i32
    %c0_i32_1 = arith.constant 0 : i32
    return %arg1, %c0_i32, %c0_i32_0 : i32, i32, i32
  }
  func.func @transform_7(%arg0: i32, %arg1: i32) -> (i32, i32, i32) {
    %c0_i32 = arith.constant 0 : i32
    %c0_i32_0 = arith.constant 0 : i32
    %c0_i32_1 = arith.constant 0 : i32
    return %arg1, %c0_i32, %c0_i32_0 : i32, i32, i32
  }
  func.func @transform_8(%arg0: i32, %arg1: i32) -> (i32, i32, i32) {
    %c0_i32 = arith.constant 0 : i32
    %c0_i32_0 = arith.constant 0 : i32
    %c0_i32_1 = arith.constant 0 : i32
    return %arg1, %c0_i32, %c0_i32_0 : i32, i32, i32
  }
  func.func @transform_9(%arg0: i32, %arg1: i32) -> (i32, i32, i32) {
    %c0_i32 = arith.constant 0 : i32
    %c0_i32_0 = arith.constant 0 : i32
    %c0_i32_1 = arith.constant 0 : i32
    return %arg1, %c0_i32, %c0_i32_0 : i32, i32, i32
  }
  func.func @transform_10(%arg0: i32, %arg1: i32) -> (i32, i32, i32) {
    %c0_i32 = arith.constant 0 : i32
    %c0_i32_0 = arith.constant 0 : i32
    %c0_i32_1 = arith.constant 0 : i32
    return %arg1, %c0_i32, %c0_i32_0 : i32, i32, i32
  }
  func.func @transform_11(%arg0: i32, %arg1: i32) -> (i32, i32, i32) {
    %c0_i32 = arith.constant 0 : i32
    %c0_i32_0 = arith.constant 0 : i32
    %c0_i32_1 = arith.constant 0 : i32
    return %arg1, %c0_i32, %c0_i32_0 : i32, i32, i32
  }
  func.func @transform_12(%arg0: i32, %arg1: i32) -> (i32, i32, i32) {
    %c0_i32 = arith.constant 0 : i32
    %c0_i32_0 = arith.constant 0 : i32
    %c0_i32_1 = arith.constant 0 : i32
    return %arg1, %c0_i32, %c0_i32_0 : i32, i32, i32
  }
  func.func @transform_13(%arg0: i32, %arg1: i32) -> (i32, i32, i32) {
    %c0_i32 = arith.constant 0 : i32
    %c0_i32_0 = arith.constant 0 : i32
    %c0_i32_1 = arith.constant 0 : i32
    return %arg1, %c0_i32, %c0_i32_0 : i32, i32, i32
  }
  func.func @transform_14(%arg0: i32, %arg1: i32) -> (i32, i32, i32) {
    %c0_i32 = arith.constant 0 : i32
    %c0_i32_0 = arith.constant 0 : i32
    %c0_i32_1 = arith.constant 0 : i32
    return %arg1, %c0_i32, %c0_i32_0 : i32, i32, i32
  }
  func.func @transform_15(%arg0: i32, %arg1: i32) -> (i32, i32, i32) {
    %c0_i32 = arith.constant 0 : i32
    %c0_i32_0 = arith.constant 0 : i32
    %c0_i32_1 = arith.constant 0 : i32
    return %arg1, %c0_i32, %c0_i32_0 : i32, i32, i32
  }
  func.func @transform_16(%arg0: i32, %arg1: i32) -> (i32, i32) {
    %c0_i32 = arith.constant 0 : i32
    %c0_i32_0 = arith.constant 0 : i32
    %c0_i32_1 = arith.constant 0 : i32
    return %c0_i32, %c0_i32_0 : i32, i32
  }
  func.func @transform_17(%arg0: i32, %arg1: i32) -> (i32, i32) {
    %c0_i32 = arith.constant 0 : i32
    %c0_i32_0 = arith.constant 0 : i32
    %c0_i32_1 = arith.constant 0 : i32
    return %c0_i32, %c0_i32_0 : i32, i32
  }
  func.func @transform_18(%arg0: i32, %arg1: i32) -> (i32, i32) {
    %c0_i32 = arith.constant 0 : i32
    %c0_i32_0 = arith.constant 0 : i32
    %c0_i32_1 = arith.constant 0 : i32
    return %c0_i32, %c0_i32_0 : i32, i32
  }
  func.func @transform_19(%arg0: i32, %arg1: i32) -> (i32, i32) {
    %c0_i32 = arith.constant 0 : i32
    %c0_i32_0 = arith.constant 0 : i32
    %c0_i32_1 = arith.constant 0 : i32
    return %c0_i32, %c0_i32_0 : i32, i32
  }
  func.func @transform_20(%arg0: i32, %arg1: i32) -> (i32, i32, i32) {
    %c0_i32 = arith.constant 0 : i32
    %c0_i32_0 = arith.constant 0 : i32
    %c0_i32_1 = arith.constant 0 : i32
    return %arg0, %c0_i32, %c0_i32_0 : i32, i32, i32
  }
}

</mosaic_0001>

<bundles_post_ra>
// kernel: bert_classifier_forward.1
= control target key start
LH: loop header
LB: loop body
LE: loop exit
PB: predicated region body
PF: predicated region fallthrough
CT: control target
= control target key end

     0   :  { %s2184_s22 = smov 0   ;;  %s2186_s23 = smov 0   ;;  %s2445_s0 = inlined_call_operand.vmem [shape: f32[16,32], index: 0, kind: input, shape index: {}]   ;;  %s2446_s1 = inlined_call_operand.vmem [shape: f32[2,8,8], index: 1, kind: input, shape index: {}]   ;;  %s2447_s2 = inlined_call_operand.vmem [shape: f32[1,32], index: 2, kind: input, shape index: {}]   ;;  %s2448_s3 = inlined_call_operand.vmem [shape: f32[1,32], index: 3, kind: input, shape index: {}]   ;;  %s2449_s4 = inlined_call_operand.vmem [shape: bf16[2,32,96], index: 4, kind: input, shape index: {}]   ;;  %s2450_s5 = inlined_call_operand.vmem [shape: f32[2,1,96], index: 5, kind: input, shape index: {}]   ;;  %s2451_s6 = inlined_call_operand.vmem [shape: bf16[2,32,32], index: 6, kind: input, shape index: {}]   ;;  %s2452_s7 = inlined_call_operand.vmem [shape: f32[2,1,32], index: 7, kind: input, shape index: {}]   ;;  %s2453_s8 = inlined_call_operand.vmem [shape: f32[2,1,32], index: 8, kind: input, shape index: {}]   ;;  %s2454_s9 = inlined_call_operand.vmem [shape: f32[2,1,32], index: 9, kind: input, shape index: {}]   ;;  %s2455_s10 = inlined_call_operand.vmem [shape: bf16[2,32,64], index: 10, kind: input, shape index: {}]   ;;  %s2456_s11 = inlined_call_operand.vmem [shape: f32[2,1,64], index: 11, kind: input, shape index: {}]   ;;  %s2457_s12 = inlined_call_operand.vmem [shape: bf16[2,64,32], index: 12, kind: input, shape index: {}]   ;;  %s2458_s13 = inlined_call_operand.vmem [shape: f32[2,1,32], index: 13, kind: input, shape index: {}]   ;;  %s2459_s14 = inlined_call_operand.vmem [shape: f32[2,1,32], index: 14, kind: input, shape index: {}]   ;;  %s2460_s15 = inlined_call_operand.vmem [shape: f32[2,1,32], index: 15, kind: input, shape index: {}]   ;;  %s2461_s16 = inlined_call_operand.vmem [shape: bf16[32,32], index: 16, kind: input, shape index: {}]   ;;  %s2462_s17 = inlined_call_operand.vmem [shape: f32[1,32], index: 17, kind: input, shape index: {}]   ;;  %s2463_s18 = inlined_call_operand.vmem [shape: bf16[32,3], index: 18, kind: input, shape index: {}]   ;;  %s2464_s19 = inlined_call_operand.vmem [shape: f32[1,3], index: 19, kind: input, shape index: {}]   ;;  %s2465_s20 = inlined_call_operand.vmem [shape: f32[2,1,3], index: 20, kind: output, shape index: {}]  }
   0x1   :  { %2473 = sst [smem:[#allocation10_spill]] %s2445_s0  ;;  %s2188_s24 = smov 0  }
   0x2   :  { %2474 = sst [smem:[#allocation11_spill]] %s2446_s1  ;;  %s2182_s1 = smov 0  }
   0x3   :  { %2475 = sst [smem:[#allocation12_spill]] %s2447_s2  ;;  %s2190_s2 = smov 0  }
   0x4   :  { %2476 = sst [smem:[#allocation13_spill]] %s2448_s3 }
   0x5   :  { %2477 = sst [smem:[#allocation14_spill]] %s2449_s4 }
   0x6   :  { %2478 = sst [smem:[#allocation15_spill]] %s2451_s6 }
   0x7   :  { %2479 = sst [smem:[#allocation16_spill]] %s2455_s10 }
   0x8   :  { %2480 = sst [smem:[#allocation17_spill]] %s2460_s15 }
   0x9   :  { %2481 = sst [smem:[#allocation18_spill]] %s2461_s16 }
   0xa   :  { %2482 = sst [smem:[#allocation19_spill]] %s2462_s17 }
   0xb   :  { %2483 = sst [smem:[#allocation20_spill]] %s2463_s18 }
   0xc   :  { %2484 = sst [smem:[#allocation21_spill]] %s2464_s19 }
   0xd   :  { %2485 = sst [smem:[#allocation22_spill]] %s2465_s20 }
   0xe LB: > { %2486 = sst [smem:[#allocation3_spill]] %s2051_s1  ;;  %s39_s25 = sadd.s32 1, %s2059_s23  ;;  %s2067_s2 = sphi %s2190_s2, %s30_s2   ;;  %s2063_s24 = sphi %s2188_s24, %s2522_s24   ;;  %s2059_s23 = sphi %s2186_s23, %s2521_s23   ;;  %s2055_s22 = sphi %s2184_s22, %s2520_s22   ;;  %s2051_s1 = sphi %s2182_s1, %s2519_s1  }
   0xf   : > { %2487 = sst [smem:[#allocation4_spill]] %s2059_s23  ;;  %s42_s3 = sadd.s32 1, %s2063_s24 }
  0x10   : > { %2488 = sst [smem:[#allocation5_spill]] %s2063_s24  ;;  %p40_p0 = scmp.ge.s32.totalorder %s39_s25, 2 }
  0x11   : > { %2489 = sst [smem:[#allocation6_spill]] %s2067_s2  ;;  %p1792_p1 = scmp.ge.s32.totalorder %s2067_s2, 1 }
  0x12   : > { %p686_p2 = scmp.lt.s32.totalorder %s2067_s2, 5  ;;  %s2524_s25 = smov (%p40_p0, %s39_s25), 0 }
  0x13   : > { %2490 = sst [smem:[#allocation7_spill]] %s2524_s25  ;;  %s2526_s3 = smov (!%p40_p0, %s42_s3), %s2063_s24 }
  0x14   : > { %p687_p3 = pnand %p1792_p1, %p686_p2  ;;  %p44_p4 = scmp.ge.s32.totalorder %s2526_s3, 2 }
  0x16   : > { %s2528_s3 = smov (%p44_p4, %s2526_s3), 0  ;;  %690 = sbr.rel (%p687_p3) target bundleno = 3282 (0xcd2), region = 100 }
  0x17   : > { %2491 = sst [smem:[#allocation8_spill]] %s2528_s3 }
  0x1b   : > { %p789_p5 = scmp.lt.s32.totalorder %s2055_s22, 1  ;;  %p797_p6 = scmp.lt.s32.totalorder %s2051_s1, 1 }
  0x1c   : > { %s2494_s21 = sld [smem:[#allocation10_spill]] }
  0x1d   : > { %s2530_s22 = smov (!%p789_p5, %s2055_s22), 1  ;;  %s2495_s23 = sld [smem:[#allocation11_spill]] }
  0x1e   : > { %2492 = sst [smem:[#allocation9_spill]] %s2530_s22  ;;  %s1793_s27 = sshll.u32 %s2530_s22, 3 }
  0x1f   : > { %s2218_s26 = scalar_select %p797_p6, %s2051_s1, 1 }
  0x20   : > { %s2496_s28 = sld [smem:[#allocation14_spill]] }
  0x21   : > { %s1841_s19 = sshll.u32 %s2218_s26, 4  ;;  %s2497_s6 = sld [smem:[#allocation15_spill]] }
  0x22   : > { %s792_s3 = scalar_lea.vmem %s2494_s21, %s1793_s27  ;;  %s2498_s10 = sld [smem:[#allocation16_spill]] }
  0x23   : > { %s2231_s2 = scalar_lea.vmem %s2495_s23, %s1793_s27  ;;  %s1844_s22 = sshll.u32 %s2218_s26, 5 }
  0x24   : > { %s2273_s23 = scalar_lea.vmem %s2457_s12, %s1844_s22  ;;  %s834_s17 = scalar_lea.vmem %s2458_s13, %s2218_s26 }
  0x25   : > { %s837_s15 = scalar_lea.vmem %s2459_s14, %s2218_s26  ;;  %s2499_s27 = sld [smem:[#allocation17_spill]] }
  0x26   : > { %s2241_s4 = scalar_lea.vmem %s2496_s28, %s1841_s19  ;;  %s2500_s20 = sld [smem:[#allocation3_spill]] }
  0x27   : > { %s2246_s30 = scalar_lea.vmem %s2497_s6, %s1841_s19  ;;  %s826_s6 = scalar_lea.vmem %s2456_s11, %s2218_s26 }
  0x28   : > { %s2263_s28 = scalar_lea.vmem %s2498_s10, %s1841_s19 }
  0x2b   : > { %s840_s10 = scalar_lea.vmem %s2499_s27, %s2218_s26 }
  0x2c   : > { %p1803_p7 = scmp.ne.s32.totalorder %s2500_s20, 0 }
  0x2d   : > { %s2501_s27 = sld [smem:[#allocation12_spill]] (!%p1803_p7) }
  0x2e   : > { %848 = sbr.rel (%p1803_p7) target bundleno = 361 (0x169), region = 104  ;;  %s2502_s0 = sld [smem:[#allocation13_spill]] (!%p1803_p7) }
  0x33   : > { %v849_v0 = vld [vmem:[%s792_s3] sm:$0xff]  ;;  %vm852_vm0 = vcmask 261120  }
  0x34   : > { %v853_v1 = vsel %vm852_vm0, %v849_v0, 0.0  ;;  %v1804_v11 = vld [vmem:[%s2501_s27] ss:$0 sm:$0xff] }
  0x35   : > { %854 = vadd.xlane.f32.xlu0 %v853_v1  ;;  %v1805_v13 = vld [vmem:[%s2502_s0] ss:$0 sm:$0xff] }
  0xbe   : > { %v855_v2 = vpop.xlane.xlu0 %854 }
  0xbf   : > { %v857_v3 = vmul.f32 0.03125, %v855_v2 }
  0xc1   : > { %v858_v4 = vsub.f32 %v849_v0, %v857_v3 }
  0xc3   : > { %v859_v5 = vmul.f32 %v858_v4, %v858_v4 }
  0xc5   : > { %v860_v6 = vsel %vm852_vm0, %v859_v5, 0.0 }
  0xc6   : > { %861 = vadd.xlane.f32.xlu0 %v860_v6 }
 0x14f   : > { %v862_v7 = vpop.xlane.xlu0 %861 }
 0x150   : > { %v863_v8 = vmul.f32 0.03125, %v862_v7 }
 0x152   : > { %v864_v9 = vadd.f32 1e-12, %v863_v8 }
 0x154   : > { %1997 = vrsqrt.f32 %v864_v9 }
 0x161   : > { %v1998_v10 = vpop.eup %1997 }
 0x162   : > { %v866_v12 = vmul.f32 %v1998_v10, %v858_v4 }
 0x164   : > { %v873_v14 = vmul.f32 %v1804_v11, %v866_v12 }
 0x166   : > { %v880_v15 = vadd.f32 %v1805_v13, %v873_v14 }
 0x168   : > { %881 = vst.msk [vmem:[#allocation2] sm:$0xff] %vm852_vm0, %v880_v15 }
 0x169 PF: > { %v1999_v16 = vld [vmem:[%s2241_s4 + $0x8] sm:$0xff]   ;;  %v2069_v17 = vmov 0.0   ;;  %v2000_v18 = vld [vmem:[%s2241_s4] sm:$0xff]   ;;  %vm2070_vm1 = vmmov 0   ;;  %vm907_vm2 = vcmask 261120   ;;  %s2503_s24 = scalar_lea.vmem %s2450_s5, %s2218_s26  ;;  %s2071_s25 = smov 96  }
 0x16a   : > { %1873 = vmatprep.subr.bf16.mxu0 %v2069_v17  ;;  %1881 = vmatprep.subr.bf16.mxu1 %v2069_v17  ;;  %v1806_v21 = vld [vmem:[%s2503_s24] ss:$0 sm:$0xff]  ;;  %s2072_s18 = smov 112   ;;  %vm958_vm3 = vcmask 130048   ;;  %vm1053_vm4 = vcmask 64512   ;;  %s2073_s19 = smov 64  }
 0x16b   : > { %1874 = vmatpush3.bf16.msra.mxu0 %v1999_v16  ;;  %1877 = vmatprep.mubr.msk.bf16.mxu0 %vm2070_vm1, %v2069_v17  ;;  %v955_v33 = vld [vmem:[%s2231_s2] sm:$0xff]  ;;  %vm1083_vm5 = vcmask 1043456   ;;  %v2001_v4 = vld [vmem:[%s2246_s30 + $0x8] sm:$0xff]   ;;  %s2074_s2 = smov 16   ;;  %s2504_s20 = scalar_lea.vmem %s2452_s7, %s2218_s26  ;;  %vm1394_vm6 = vcmask 523264  }
 0x16c   : > { %1875 = vmatprep.subr.bf16.mxu0 %v2069_v17  ;;  %1883 = vmatprep.mubr.msk.bf16.mxu1 %vm2070_vm1, %v2069_v17  ;;  %v2002_v5 = vld [vmem:[%s2246_s30] sm:$0xff]   ;;  %s2505_s27 = scalar_lea.vmem %s2453_s8, %s2218_s26 }
 0x16f   : > { %v2303_v19 = vld [vmem:[#allocation2] sm:$0xff]  ;;  %1876 = vmatpush3.bf16.msra.mxu0 %v2000_v18 }
 0x170   : > { %v883_v20 = vpack.c.bf16 %v2303_v19, %v2303_v19  ;;  %1887 = vmatprep.subr.bf16.mxu0 %v2069_v17  ;;  %v1814_v18 = vld [vmem:[%s2504_s20] ss:$0 sm:$0xff] }
 0x172   : > { %1878 = vmatmul.mubr.msk.bf16.vlgmr.msra.gmra.mxu0 %vm907_vm2, %v883_v20 }
 0x173   : > { %1889 = vmatprep.mubr.msk.bf16.mxu0 %vm2070_vm1, %v2069_v17 }
 0x232   : > { %v945_v22 = vpop.f32.mrf.mxu0 }
 0x233   : > { %v946_v23 = vadd.f32 %v1806_v21, %v945_v22 }
 0x234   : > { %v1879_v24 = vpop.f32.mrf.mxu0 }
 0x235   : > { %v951_v25 = vpack.c.bf16 %v946_v23, %v946_v23 }
 0x236   : > { %v948_v26 = vpop.f32.mrf.mxu0 }
 0x237   : > { %956 = vrot.lane.b32.xlu1 %v951_v25, %s2071_s25  ;;  %953 = vrot.lane.b32.xlu0 %v951_v25, %s2072_s18 }
 0x238   : > { %v1880_v27 = vpop.f32.mrf.mxu0 }
 0x2a9   : > { %v957_v28 = vpop.permute.xlu1 %956  ;;  %v954_v29 = vpop.permute.xlu0 %953 }
 0x2aa   : > { %1005 = vrot.lane.b32.xlu0 %v954_v29, %s2071_s25  ;;  %v963_v30 = vsel %vm958_vm3, %v957_v28, 0 }
 0x2ab   : > { %1882 = vmatpush3.bf16.xpose.msra.mxu1 %v963_v30 }
 0x2ac   : > { %1893 = vmatprep.subr.bf16.mxu1 %v2069_v17 }
 0x2b2   : > { %1884 = vmatmul.mubr.msk.bf16.vlgmr.msra.gmra.mxu1 %vm958_vm3, %v951_v25 }
 0x2b3   : > { %1895 = vmatprep.mubr.msk.bf16.mxu1 %vm2070_vm1, %v2069_v17 }
 0x31c   : > { %v1006_v31 = vpop.permute.xlu0 %1005 }
 0x31d   : > { %v1011_v32 = vsel %vm958_vm3, %v1006_v31, 0 }
 0x31e   : > { %1888 = vmatpush3.bf16.xpose.msra.mxu0 %v1011_v32  ;;  %v2003_v32 = vld [vmem:[%s2263_s28 + $0x8] sm:$0xff]  }
 0x31f   : > { %1899 = vmatprep.subr.bf16.mxu0 %v2069_v17 }
 0x325   : > { %1890 = vmatmul.mubr.msk.bf16.vlgmr.msra.gmra.mxu0 %vm958_vm3, %v954_v29 }
 0x326   : > { %1901 = vmatprep.mubr.msk.bf16.mxu0 %vm2070_vm1, %v2069_v17 }
 0x372   : > { %v999_v34 = vpop.f32.mrf.mxu1 }
 0x373   : > { %v1000_v35 = vadd.f32 %v999_v34, %v955_v33 }
 0x374   : > { %v1885_v36 = vpop.f32.mrf.mxu1 }
 0x375   : > { %v1054_v37 = vsel %vm1053_vm4, %v1000_v35, -inf }
 0x376   : > { %v1002_v38 = vpop.f32.mrf.mxu1  ;;  %1055 = vmax.xlane.f32.xlu0 %v1054_v37  ;;  %v1818_v37 = vld [vmem:[%s2505_s27] ss:$0 sm:$0xff] }
 0x378   : > { %v1886_v39 = vpop.f32.mrf.mxu1 }
 0x3e5   : > { %v1047_v40 = vpop.f32.mrf.mxu0 }
 0x3e6   : > { %v1048_v41 = vadd.f32 %v1047_v40, %v955_v33  ;;  %v2004_v33 = vld [vmem:[%s2263_s28] sm:$0xff]   ;;  %s2506_s28 = scalar_lea.vmem %s2454_s9, %s2218_s26 }
 0x3e7   : > { %v1891_v42 = vpop.f32.mrf.mxu0  ;;  %v1819_v39 = vld [vmem:[%s2506_s28] ss:$0 sm:$0xff] }
 0x3e8   : > { %v1057_v43 = vsel %vm1053_vm4, %v1048_v41, -inf }
 0x3e9   : > { %1058 = vmax.xlane.f32.xlu1 %v1057_v43  ;;  %v1050_v44 = vpop.f32.mrf.mxu0  ;;  %v2005_v43 = vld [vmem:[%s2273_s23 + $0x18] sm:$0xff]  }
 0x3ea   : > { %v2006_v44 = vld [vmem:[%s2273_s23 + $0x10] sm:$0xff]  }
 0x3eb   : > { %v1892_v45 = vpop.f32.mrf.mxu0 }
 0x3ec   : > { %v2007_v45 = vld [vmem:[%s2273_s23 + $0x8] sm:$0xff]  }
 0x3fa   : > { %1127 = vrot.lane.b32.xlu1 %v954_v29, %s2073_s19 }
 0x3ff   : > { %v1056_v46 = vpop.xlane.xlu0 %1055 }
 0x400   : > { %v1060_v47 = vsub.f32 %v1000_v35, %v1056_v46  ;;  %v2008_v46 = vld [vmem:[%s2273_s23] sm:$0xff]  }
 0x402   : > { %v1062_v50 = vmul.f32 1.442695, %v1060_v47  ;;  %v1820_v47 = vld [vmem:[%s826_s6] ss:$0 sm:$0xff] }
 0x472   : > { %v1059_v48 = vpop.xlane.xlu1 %1058 }
 0x473   : > { %v1061_v49 = vsub.f32 %v1048_v41, %v1059_v48 }
 0x475   : > { %v1064_v51 = vmul.f32 1.442695, %v1061_v49 }
 0x476   : > { %v1128_v52 = vpop.permute.xlu1 %1127 }
 0x477   : > { %2009 = vpow2.f32 %v1064_v51  ;;  %v1133_v53 = vsel %vm1083_vm5, %v1128_v52, 0 }
 0x478   : > { %1900 = vmatpush3.bf16.msra.mxu0 %v1133_v53  ;;  %2011 = vpow2.f32 %v1062_v50 }
 0x479   : > { %1913 = vmatprep.subr.bf16.mxu0 %v2069_v17 }
 0x484   : > { %v2010_v54 = vpop.eup %2009 }
 0x485   : > { %v1069_v55 = vsel %vm1053_vm4, %v2010_v54, 0.0  ;;  %v2012_v56 = vpop.eup %2011 }
 0x486   : > { %1070 = vadd.xlane.f32.xlu0 %v1069_v55  ;;  %v1066_v57 = vsel %vm1053_vm4, %v2012_v56, 0.0 }
 0x48a   : > { %1067 = vadd.xlane.f32.xlu0 %v1066_v57 }
 0x4a0   : > { %1078 = vrot.lane.b32.xlu0 %v951_v25, %s2073_s19  ;;  %s2508_s19 = sld [smem:[#allocation3_spill]] }
 0x4a6   : > { %p1832_p8 = scmp.ne.s32.totalorder %s2508_s19, 1 }
 0x4a7   : > { %s2509_s1 = sld [smem:[#allocation18_spill]] (!%p1832_p8) }
 0x4a8   : > { %s2511_s22 = sld [smem:[#allocation20_spill]] (!%p1832_p8) }
 0x4a9   : > { %s2513_s4 = sld [smem:[#allocation19_spill]] (!%p1832_p8) }
 0x4aa   : > { %s2514_s6 = sld [smem:[#allocation9_spill]] (!%p1832_p8) }
 0x4ab   : > { %s2515_s21 = sld [smem:[#allocation21_spill]] (!%p1832_p8) }
 0x4ac   : > { %s2516_s18 = sld [smem:[#allocation22_spill]] (!%p1832_p8) }
 0x4ad   : > { %s2510_s20 = smov (!%p1832_p8), %s2509_s1 }
 0x4ae   : > { %s2512_s27 = smov (!%p1832_p8), %s2511_s22 }
 0x4b2   : > { %s2517_s19 = scalar_lea.vmem (!%p1832_p8), %s2516_s18, %s2514_s6 }
 0x50f   : > { %v1071_v58 = vpop.xlane.xlu0 %1070 }
 0x510   : > { %2013 = vrcp.f32 %v1071_v58 }
 0x513   : > { %v1068_v59 = vpop.xlane.xlu0 %1067 }
 0x514   : > { %2015 = vrcp.f32 %v1068_v59 }
 0x517   : > { %v1079_v60 = vpop.permute.xlu0 %1078 }
 0x518   : > { %v1085_v61 = vsel %vm1083_vm5, %v1079_v60, 0 }
 0x519   : > { %1894 = vmatpush3.bf16.msra.mxu1 %v1085_v61 }
 0x51a   : > { %1905 = vmatprep.subr.bf16.mxu1 %v2069_v17 }
 0x51d   : > { %v2014_v62 = vpop.eup %2013 }
 0x51e   : > { %v1075_v63 = vmul.f32 %v2014_v62, %v2010_v54  ;;  %v1824_v62 = vld [vmem:[%s834_s17] ss:$0 sm:$0xff] }
 0x520   : > { %v1077_v0 = vpack.c.bf16 %v1075_v63, %v1075_v63 }
 0x521   : > { %v2016_v1 = vpop.eup %2015 }
 0x522   : > { %1902 = vmatmul.mubr.msk.bf16.vlgmr.msra.gmra.mxu0 %vm1053_vm4, %v1077_v0  ;;  %v1073_v2 = vmul.f32 %v2016_v1, %v2012_v56 }
 0x523   : > { %1917 = vmatprep.mubr.msk.bf16.mxu0 %vm2070_vm1, %v2069_v17  ;;  %1914 = vmatpush3.bf16.msra.mxu0 %v2003_v32 }
 0x524   : > { %v1076_v3 = vpack.c.bf16 %v1073_v2, %v1073_v2  ;;  %1915 = vmatprep.subr.bf16.mxu0 %v2069_v17 }
 0x526   : > { %1896 = vmatmul.mubr.msk.bf16.vlgmr.msra.gmra.mxu1 %vm1053_vm4, %v1076_v3 }
 0x527   : > { %1909 = vmatprep.mubr.msk.bf16.mxu1 %vm2070_vm1, %v2069_v17  ;;  %1906 = vmatpush3.bf16.msra.mxu1 %v2001_v4 }
 0x528   : > { %1907 = vmatprep.subr.bf16.mxu1 %v2069_v17  ;;  %1916 = vmatpush3.bf16.msra.mxu0 %v2004_v33 }
 0x52b   : > { %1908 = vmatpush3.bf16.msra.mxu1 %v2002_v5 }
 0x52c   : > { %1921 = vmatprep.subr.bf16.mxu1 %v2069_v17 }
 0x5e2   : > { %v1169_v6 = vpop.f32.mrf.mxu0 }
 0x5e3   : > { %1176 = vrot.lane.b32.xlu1 %v1169_v6, %s2074_s2 }
 0x5e4   : > { %v1903_v7 = vpop.f32.mrf.mxu0 }
 0x5e6   : > { %v1121_v8 = vpop.f32.mrf.mxu1  ;;  %v1172_v9 = vpop.f32.mrf.mxu0 }
 0x5e8   : > { %v1897_v10 = vpop.f32.mrf.mxu1  ;;  %v1904_v11 = vpop.f32.mrf.mxu0 }
 0x5ea   : > { %v1124_v12 = vpop.f32.mrf.mxu1 }
 0x5ec   : > { %v1898_v13 = vpop.f32.mrf.mxu1 }
 0x655   : > { %v1177_v14 = vpop.permute.xlu1 %1176 }
 0x656   : > { %v1179_v15 = vsel %vm958_vm3, %v1121_v8, %v1177_v14 }
 0x657   : > { %v1180_v16 = vpack.c.bf16 %v1179_v15, %v1179_v15  ;;  %v1830_v15 = vld [vmem:[%s837_s15] ss:$0 sm:$0xff] }
 0x659   : > { %1910 = vmatmul.mubr.msk.bf16.vlgmr.msra.gmra.mxu1 %vm907_vm2, %v1180_v16 }
 0x65a   : > { %1929 = vmatprep.mubr.msk.bf16.mxu1 %vm2070_vm1, %v2069_v17  ;;  %1922 = vmatpush3.bf16.msra.mxu1 %v2005_v43 }
 0x65b   : > { %1923 = vmatprep.subr.bf16.mxu1 %v2069_v17 }
 0x65e   : > { %1924 = vmatpush3.bf16.msra.mxu1 %v2006_v44 }
 0x65f   : > { %1925 = vmatprep.subr.bf16.mxu1 %v2069_v17 }
 0x662   : > { %1926 = vmatpush3.bf16.msra.mxu1 %v2007_v45 }
 0x663   : > { %1927 = vmatprep.subr.bf16.mxu1 %v2069_v17 }
 0x666   : > { %1928 = vmatpush3.bf16.msra.mxu1 %v2008_v46 }
 0x719   : > { %v1241_v20 = vpop.f32.mrf.mxu1 }
 0x71a   : > { %v1242_v21 = vadd.f32 %v1814_v18, %v1241_v20  ;;  %v1831_v18 = vld [vmem:[%s840_s10] ss:$0 sm:$0xff] }
 0x71b   : > { %v1911_v22 = vpop.f32.mrf.mxu1 }
 0x71c   : > { %v1247_v23 = vadd.f32 %v1242_v21, %v2303_v19 }
 0x71d   : > { %v1244_v24 = vpop.f32.mrf.mxu1 }
 0x71e   : > { %v1250_v25 = vsel %vm907_vm2, %v1247_v23, 0.0 }
 0x71f   : > { %1251 = vadd.xlane.f32.xlu1 %v1250_v25  ;;  %v1912_v26 = vpop.f32.mrf.mxu1 }
 0x7a8   : > { %v1252_v27 = vpop.xlane.xlu1 %1251 }
 0x7a9   : > { %v1254_v28 = vmul.f32 0.03125, %v1252_v27 }
 0x7ab   : > { %v1255_v29 = vsub.f32 %v1247_v23, %v1254_v28 }
 0x7ad   : > { %v1256_v30 = vmul.f32 %v1255_v29, %v1255_v29 }
 0x7af   : > { %v1257_v31 = vsel %vm907_vm2, %v1256_v30, 0.0 }
 0x7b0   : > { %1258 = vadd.xlane.f32.xlu0 %v1257_v31 }
 0x839   : > { %v1259_v19 = vpop.xlane.xlu0 %1258 }
 0x83a   : > { %v1260_v34 = vmul.f32 0.03125, %v1259_v19 }
 0x83c   : > { %v1261_v35 = vadd.f32 1e-12, %v1260_v34 }
 0x83e   : > { %2017 = vrsqrt.f32 %v1261_v35 }
 0x84b   : > { %v2018_v36 = vpop.eup %2017 }
 0x84c   : > { %v1263_v38 = vmul.f32 %v2018_v36, %v1255_v29 }
 0x84e   : > { %v1270_v40 = vmul.f32 %v1818_v37, %v1263_v38 }
 0x850   : > { %v1277_v41 = vadd.f32 %v1819_v39, %v1270_v40 }
 0x852   : > { %v1278_v42 = vpack.c.bf16 %v1277_v41, %v1277_v41 }
 0x854   : > { %1918 = vmatmul.mubr.msk.bf16.vlgmr.msra.gmra.mxu0 %vm907_vm2, %v1278_v42 }
 0x914   : > { %v1339_v48 = vpop.f32.mrf.mxu0 }
 0x915   : > { %v1340_v49 = vadd.f32 %v1820_v47, %v1339_v48 }
 0x916   : > { %v1919_v50 = vpop.f32.mrf.mxu0 }
 0x917   : > { %v1346_v51 = vmul.f32 0.044715, %v1340_v49  ;;  %v1345_v17 = vmul.f32 0.5, %v1340_v49 }
 0x918   : > { %v1342_v52 = vpop.f32.mrf.mxu0 }
 0x919   : > { %v1347_v53 = vmul.f32 %v1346_v51, %v1340_v49 }
 0x91a   : > { %v1920_v54 = vpop.f32.mrf.mxu0 }
 0x91b   : > { %v1348_v55 = vmul.f32 %v1347_v53, %v1340_v49 }
 0x91d   : > { %v1349_v56 = vadd.f32 %v1348_v55, %v1340_v49 }
 0x91f   : > { %v1350_v57 = vmul.f32 0.7978846, %v1349_v56 }
 0x921   : > { %2019 = vtanh.f32 %v1350_v57 }
 0x92e   : > { %v2020_v58 = vpop.eup %2019 }
 0x92f   : > { %v1352_v59 = vadd.f32 1.0, %v2020_v58 }
 0x931   : > { %v1353_v60 = vmul.f32 %v1352_v59, %v1345_v17 }
 0x933   : > { %v1354_v61 = vpack.c.bf16 %v1353_v60, %v1353_v60 }
 0x935   : > { %1930 = vmatmul.mubr.msk.bf16.vlgmr.msra.gmra.mxu1 %vm1394_vm6, %v1354_v61 }
 0x9f5   : > { %v1432_v63 = vpop.f32.mrf.mxu1 }
 0x9f6   : > { %v1433_v0 = vadd.f32 %v1824_v62, %v1432_v63 }
 0x9f7   : > { %v1931_v1 = vpop.f32.mrf.mxu1 }
 0x9f8   : > { %v1438_v2 = vadd.f32 %v1433_v0, %v1277_v41 }
 0x9f9   : > { %v1435_v3 = vpop.f32.mrf.mxu1 }
 0x9fa   : > { %v1441_v4 = vsel %vm907_vm2, %v1438_v2, 0.0 }
 0x9fb   : > { %1442 = vadd.xlane.f32.xlu1 %v1441_v4  ;;  %v1932_v5 = vpop.f32.mrf.mxu1 }
 0xa84   : > { %v1443_v6 = vpop.xlane.xlu1 %1442 }
 0xa85   : > { %v1444_v7 = vmul.f32 0.03125, %v1443_v6 }
 0xa87   : > { %v1445_v8 = vsub.f32 %v1438_v2, %v1444_v7 }
 0xa89   : > { %v1446_v9 = vmul.f32 %v1445_v8, %v1445_v8 }
 0xa8b   : > { %v1447_v10 = vsel %vm907_vm2, %v1446_v9, 0.0 }
 0xa8c   : > { %1448 = vadd.xlane.f32.xlu0 %v1447_v10 }
 0xb15   : > { %v1449_v11 = vpop.xlane.xlu0 %1448 }
 0xb16   : > { %v1450_v12 = vmul.f32 0.03125, %v1449_v11 }
 0xb18   : > { %v1451_v13 = vadd.f32 1e-12, %v1450_v12 }
 0xb1a   : > { %2021 = vrsqrt.f32 %v1451_v13 }
 0xb27   : > { %v2022_v14 = vpop.eup %2021 }
 0xb28   : > { %v1453_v16 = vmul.f32 %v2022_v14, %v1445_v8 }
 0xb2a   : > { %v1460_v20 = vmul.f32 %v1830_v15, %v1453_v16  ;;  %1472 = sbr.rel (%p1832_p8) target bundleno = 3282 (0xcd2), region = 108 }
 0xb2c   : > { %v1467_v21 = vadd.f32 %v1831_v18, %v1460_v20 }
 0xb2e   : > { %1468 = vst.msk [vmem:[#allocation2] sm:$0xff] %vm907_vm2, %v1467_v21 }
 0xb2f   : > { %v2023_v22 = vld [vmem:[%s2509_s1 + $0x8] sm:$0xff]   ;;  %v2075_v23 = vmov 0.0   ;;  %v2024_v24 = vld [vmem:[%s2510_s20] sm:$0xff]   ;;  %vm2076_vm7 = vmmov 0   ;;  %v1473_v25 = vpack.c.bf16 %v1467_v21, %v1467_v21  ;;  %vm1596_vm8 = vcmask 16384  }
 0xb30   : > { %1933 = vmatprep.subr.bf16.mxu0 %v2075_v23  ;;  %1941 = vmatprep.subr.bf16.mxu1 %v2075_v23  ;;  %v2025_v26 = vld [vmem:[%s2511_s22 + $0x8] sm:$0xff]   ;;  %v2026_v27 = vld [vmem:[%s2512_s27] sm:$0xff]  }
 0xb31   : > { %1934 = vmatpush3.bf16.msra.mxu0 %v2023_v22  ;;  %1937 = vmatprep.mubr.msk.bf16.mxu0 %vm2076_vm7, %v2075_v23  ;;  %v1478_v28 = vld [vmem:[%s2513_s4] sm:$0x1] }
 0xb32   : > { %1935 = vmatprep.subr.bf16.mxu0 %v2075_v23  ;;  %1945 = vmatprep.mubr.msk.bf16.mxu1 %vm2076_vm7, %v2075_v23  ;;  %v1540_v35 = vld [vmem:[%s2515_s21] sm:$0x1] }
 0xb33   : > { %1942 = vmatpush3.bf16.msra.mxu1 %v2025_v26 }
 0xb34   : > { %1943 = vmatprep.subr.bf16.mxu1 %v2075_v23 }
 0xb35   : > { %1936 = vmatpush3.bf16.msra.mxu0 %v2024_v24 }
 0xb37   : > { %1944 = vmatpush3.bf16.msra.mxu1 %v2026_v27 }
 0xb38   : > { %1938 = vmatmul.mubr.msk.bf16.vlgmr.msra.gmra.mxu0 %vm907_vm2, %v1473_v25 }
 0xbf8   : > { %v1528_v29 = vpop.f32.mrf.mxu0 }
 0xbf9   : > { %v1529_v30 = vadd.f32 %v1528_v29, %v1478_v28 }
 0xbfa   : > { %v1939_v31 = vpop.f32.mrf.mxu0 }
 0xbfb   : > { %2027 = vtanh.f32 %v1529_v30 }
 0xbfc   : > { %v1531_v32 = vpop.f32.mrf.mxu0 }
 0xbfe   : > { %v1940_v33 = vpop.f32.mrf.mxu0 }
 0xc08   : > { %v2028_v19 = vpop.eup %2027 }
 0xc09   : > { %v1535_v34 = vpack.c.bf16 %v2028_v19, %v2028_v19 }
 0xc0b   : > { %1946 = vmatmul.mubr.msk.bf16.vlgmr.msra.gmra.mxu1 %vm907_vm2, %v1535_v34 }
 0xccb   : > { %v1590_v36 = vpop.f32.mrf.mxu1 }
 0xccc   : > { %v1591_v37 = vadd.f32 %v1590_v36, %v1540_v35 }
 0xccd   : > { %v1947_v38 = vpop.f32.mrf.mxu1 }
 0xcce   : > { %1597 = vst.msk [vmem:[%s2517_s19] sm:$0x1] %vm1596_vm8, %v1591_v37 }
 0xccf   : > { %v1593_v39 = vpop.f32.mrf.mxu1 }
 0xcd1   : > { %v1948_v40 = vpop.f32.mrf.mxu1 }
 0xcd2 PF: > { %s2518_s2 = sld [smem:[#allocation6_spill]] }
 0xcd3   : > { %s2519_s1 = sld [smem:[#allocation4_spill]] }
 0xcd4   : > { %s2520_s22 = sld [smem:[#allocation5_spill]] }
 0xcd5   : > { %s2521_s23 = sld [smem:[#allocation7_spill]] }
 0xcd6   : > { %s2522_s24 = sld [smem:[#allocation8_spill]] }
 0xcd8   : > { %s30_s2 = sadd.s32 1, %s2518_s2  }
 0xcd9   : > { %p27_p9 = scmp.ge.s32.totalorder %s30_s2, 6  }
 0xcdb   :  { %29 = sbr.rel (!%p27_p9) target bundleno = 14 (0xe), region = 177 }

</bundles_post_ra>
